<compile_context>
chip_gen: v7x
topology: tpu7x:2x2x1
jax: 0.10.0
libtpu: 0.0.40
codegen_flags: <defaults>
</compile_context>

<pallas_src>
import functools
import math

import jax
import jax.numpy as jnp
from jax import lax
from jax.experimental import pallas as pl
from jax.experimental.pallas import tpu as pltpu

EPS = 1e-5  # PyTorch InstanceNorm2d default eps (affine=False, biased variance)


def _round_up(a, b):
    return (a + b - 1) // b * b


def _vmem_limit_bytes():
    """~75% of per-core VMEM, capped; never request the whole core."""
    phys = 64 * 1024 * 1024  # conservative fallback (v7x per-core physical)
    try:
        phys = int(pltpu.get_tpu_info().vmem_capacity_bytes)
    except Exception:
        pass
    return int(min(phys * 3 // 4, 96 * 1024 * 1024))


def _make_kernel(C_pad, n_pad, H, W, cdtype):
    Wp = W + 2
    inv_cnt = 1.0 / float(H * W)

    def shift(a, o):
        # out[:, p] = a[:, (p + o) % n_pad]; XLU lane rotate, no slice/concat
        # copies.  (pltpu.roll == jnp.roll semantics; shift kept non-negative.)
        amt = (-o) % n_pad
        if amt == 0:
            return a
        return pltpu.roll(a, amt, axis=1)

    def kernel(mask_ref, x_ref, w1_ref, w2_ref, o_ref):
        masks = mask_ref[...]                                   # (5, n_pad) f32
        # hoisted (1,n)->(C,n) broadcast, reused by both InstanceNorms
        m_int = jnp.broadcast_to(masks[0:1, :], (C_pad, n_pad))
        m_col0 = masks[1:2, :] > 0.5
        m_colL = masks[2:3, :] > 0.5
        m_row0 = masks[3:4, :] > 0.5
        m_rowL = masks[4:5, :] > 0.5

        x = x_ref[0].astype(jnp.float32)                        # (C_pad, n_pad)

        def conv3x3(a, w_ref):
            # Per kh: hoist the row shift, stack the 3 kw taps along K and do a
            # single MXU dot (internal accumulation over kw); 2 VPU adds left.
            acc = None
            for kh in range(3):
                row = shift(a, (kh - 1) * Wp)
                taps = jnp.concatenate(
                    [shift(row, -1), row, shift(row, 1)], axis=0
                ).astype(cdtype)                                # (3*C_pad, n_pad)
                part = jnp.dot(w_ref[kh], taps,
                               preferred_element_type=jnp.float32)
                acc = part if acc is None else acc + part
            return acc                                          # f32 accumulator

        def instance_norm(y):
            # One-pass masked stats over the H*W interior, on the f32 accumulator.
            ym = y * m_int
            s1 = jnp.sum(ym, axis=-1, keepdims=True)
            s2 = jnp.sum(y * ym, axis=-1, keepdims=True)
            mean = s1 * inv_cnt
            var = jnp.maximum(s2 * inv_cnt - mean * mean, 0.0)
            return (y - mean) * lax.rsqrt(var + EPS)

        def reflect_fill(h):
            # Regenerate ReflectionPad2d(1) of the interior entirely in VMEM;
            # columns first so the row fill picks up doubly-reflected corners.
            h = jnp.where(m_col0, shift(h, 2), h)               # col 0    <- col 2
            h = jnp.where(m_colL, shift(h, -2), h)              # col Wp-1 <- col Wp-3
            h = jnp.where(m_row0, shift(h, 2 * Wp), h)          # row 0    <- row 2
            h = jnp.where(m_rowL, shift(h, -2 * Wp), h)         # row Hp-1 <- row Hp-3
            return h

        # Stage 1: conv -> InstanceNorm -> ReLU (conv bias cancels exactly in IN).
        h = jnp.maximum(instance_norm(conv3x3(x, w1_ref)), 0.0)
        h = reflect_fill(h)              # intermediate never leaves VMEM
        # Stage 2: conv -> InstanceNorm, residual add with the padded input.
        y = instance_norm(conv3x3(h, w2_ref))
        out = x + y
        # Emit a valid reflected border so padded slabs can be chained.
        o_ref[0] = reflect_fill(out).astype(o_ref.dtype)

    return kernel


def make_masks(H, W, n_pad):
    """Interior / border indicator rows on the flattened, lane-padded grid."""
    Hp, Wp = H + 2, W + 2
    n_flat = Hp * Wp
    idx = jnp.arange(n_pad, dtype=jnp.int32)
    r = idx // Wp
    s = idx % Wp
    valid = idx < n_flat

    def as_f32(c):
        return (c & valid).astype(jnp.float32)

    return jnp.stack(
        [
            as_f32((r >= 1) & (r <= H) & (s >= 1) & (s <= W)),  # interior
            as_f32(s == 0),                                     # left pad col
            as_f32(s == Wp - 1),                                # right pad col
            as_f32(r == 0),                                     # top pad row
            as_f32(r == Hp - 1),                                # bottom pad row
        ],
        axis=0,
    )  # (5, n_pad)


def prepare_weights(w, C_pad, dtype):
    """(C,C,3,3) OIHW conv weight -> (3, C_pad, 3*C_pad) stacked-K taps:
    out[kh, co, kw*C_pad + ci] = w[co, ci, kh, kw], zero-padded channels."""
    C = w.shape[0]
    wt = jnp.transpose(w, (2, 3, 0, 1))                          # (kh,kw,co,ci)
    wt = jnp.pad(wt, ((0, 0), (0, 0), (0, C_pad - C), (0, C_pad - C)))
    wt = jnp.transpose(wt, (0, 2, 1, 3)).reshape(3, C_pad, 3 * C_pad)
    return wt.astype(dtype)


def residual_block_padded(xslab, w1t, w2t, masks, *, H, W, compute_dtype):
    """Fused residual block on an aligned, reflection-padded (N, C_pad, n_pad)
    slab.  Returns a slab of the same shape/dtype whose 1-pixel border is again
    a valid reflection of the new interior, so blocks can be chained without
    HBM pad/slice round trips."""
    N, C_pad, n_pad = xslab.shape
    kernel = _make_kernel(C_pad, n_pad, H, W, compute_dtype)
    return pl.pallas_call(
        kernel,
        out_shape=jax.ShapeDtypeStruct((N, C_pad, n_pad), compute_dtype),
        grid=(N,),
        in_specs=[
            pl.BlockSpec((5, n_pad), lambda n: (0, 0)),                # masks
            pl.BlockSpec((1, C_pad, n_pad), lambda n: (n, 0, 0)),      # activation
            pl.BlockSpec((3, C_pad, 3 * C_pad), lambda n: (0, 0, 0)),  # conv1 taps
            pl.BlockSpec((3, C_pad, 3 * C_pad), lambda n: (0, 0, 0)),  # conv2 taps
        ],
        out_specs=pl.BlockSpec((1, C_pad, n_pad), lambda n: (n, 0, 0)),
        compiler_params=pltpu.CompilerParams(
            dimension_semantics=("parallel",),
            vmem_limit_bytes=_vmem_limit_bytes(),
        ),
    )(masks, xslab, w1t, w2t)


def residual_block(x, w1, b1, w2, b2, *, compute_dtype=jnp.float32):
    """ResidualBlock forward.  x: (N, C, H, W).

    b1/b2 are accepted for nn.Conv2d API parity but are mathematically
    cancelled by InstanceNorm2d(affine=False), so they are unused (exact)."""
    del b1, b2
    N, C, H, W = x.shape
    Hp, Wp = H + 2, W + 2
    n_flat = Hp * Wp

    cdt = jax.dtypes.canonicalize_dtype(compute_dtype)
    sub = 16 if cdt == jnp.bfloat16 else 8        # sublane tile (packed for bf16)
    C_pad = _round_up(max(C, sub), sub)
    n_pad = _round_up(n_flat, 128)                # lane-dense, tile-aligned slab

    # Host-side glue (once per block chain): reflection pad, flatten the spatial
    # dims lane-dense, align channel/lane axes to hardware tiles, cast for DMA.
    xpad = jnp.pad(x, ((0, 0), (0, 0), (1, 1), (1, 1)), mode="reflect")
    xslab = jnp.pad(
        xpad.reshape(N, C, n_flat),
        ((0, 0), (0, C_pad - C), (0, n_pad - n_flat)),
    ).astype(cdt)

    w1t = prepare_weights(w1, C_pad, cdt)
    w2t = prepare_weights(w2, C_pad, cdt)
    masks = make_masks(H, W, n_pad)

    out = residual_block_padded(xslab, w1t, w2t, masks, H=H, W=W,
                                compute_dtype=cdt)
    out = out[:, :C, :n_flat].reshape(N, C, Hp, Wp)[:, :, 1:-1, 1:-1]
    return out.astype(x.dtype)


# ---------------- pure-JAX reference (for verification) ----------------
def _instance_norm_ref(y):
    mean = jnp.mean(y, axis=(2, 3), keepdims=True)
    var = jnp.mean(jnp.square(y - mean), axis=(2, 3), keepdims=True)
    return (y - mean) * lax.rsqrt(var + EPS)


def _conv3x3_ref(x, w, b):
    xpad = jnp.pad(x, ((0, 0), (0, 0), (1, 1), (1, 1)), mode="reflect")
    y = lax.conv_general_dilated(
        xpad, w, window_strides=(1, 1), padding="VALID",
        dimension_numbers=("NCHW", "OIHW", "NCHW"))
    return y + b[None, :, None, None]


def residual_block_ref(x, w1, b1, w2, b2):
    h = jnp.maximum(_instance_norm_ref(_conv3x3_ref(x, w1, b1)), 0.0)
    return x + _instance_norm_ref(_conv3x3_ref(h, w2, b2))


if __name__ == "__main__":
    N, C, H, W = 2, 4, 16, 16

    key = jax.random.PRNGKey(0)
    kx, kw1, kb1, kw2, kb2 = jax.random.split(key, 5)

    x = jax.random.normal(kx, (N, C, H, W), dtype=jnp.float32)

    fan_in = C * 3 * 3
    bound = 1.0 / math.sqrt(fan_in)
    w1 = jax.random.uniform(kw1, (C, C, 3, 3), jnp.float32, -bound, bound)
    b1 = jax.random.uniform(kb1, (C,), jnp.float32, -bound, bound)
    w2 = jax.random.uniform(kw2, (C, C, 3, 3), jnp.float32, -bound, bound)
    b2 = jax.random.uniform(kb2, (C,), jnp.float32, -bound, bound)

    ref = jax.block_until_ready(residual_block_ref(x, w1, b1, w2, b2))

    # f32 MXU path: tight check against the f32 reference.
    run_f32 = jax.jit(functools.partial(residual_block, compute_dtype=jnp.float32))
    out_f32 = jax.block_until_ready(run_f32(x, w1, b1, w2, b2))
    assert out_f32.shape == (N, C, H, W), out_f32.shape
    assert jnp.allclose(out_f32, ref, atol=1e-3, rtol=1e-3), (
        float(jnp.max(jnp.abs(out_f32 - ref))))

    # bf16 MXU-operand path (production default per perf review): loose check,
    # since operands are quantised to bf16 (accumulation / IN stats stay f32).
    run_bf16 = jax.jit(functools.partial(residual_block, compute_dtype=jnp.bfloat16))
    out_bf16 = jax.block_until_ready(run_bf16(x, w1, b1, w2, b2))
    assert out_bf16.shape == (N, C, H, W), out_bf16.shape
    assert jnp.allclose(out_bf16.astype(jnp.float32), ref, atol=1e-1, rtol=5e-2), (
        float(jnp.max(jnp.abs(out_bf16.astype(jnp.float32) - ref))))

    print("KERNEL_OK")
</pallas_src>

<mosaic_0001>
module attributes {stable_mosaic.version = 11 : i64} {
  func.func @kernel(%arg0: i32, %arg1: memref<5x384xf32, #tpu.memory_space<vmem>>, %arg2: memref<1x8x384xf32, #tpu.memory_space<vmem>>, %arg3: memref<3x8x24xf32, #tpu.memory_space<vmem>>, %arg4: memref<3x8x24xf32, #tpu.memory_space<vmem>>, %arg5: memref<1x8x384xf32, #tpu.memory_space<vmem>>) attributes {dimension_semantics = [#tpu.dimension_semantics<parallel>], iteration_bounds = array<i64: 2>, scalar_prefetch = 0 : i64, scratch_operands = 0 : i64, tpu.core_type = #tpu.core_type<tc>, window_params = [{pipeline_mode = #tpu.pipeline_mode<synchronous>, transform_indices = @transform_0, window_bounds = array<i64: 5, 384>}, {transform_indices = @transform_1, window_bounds = array<i64: 1, 8, 384>}, {pipeline_mode = #tpu.pipeline_mode<synchronous>, transform_indices = @transform_2, window_bounds = array<i64: 3, 8, 24>}, {pipeline_mode = #tpu.pipeline_mode<synchronous>, transform_indices = @transform_3, window_bounds = array<i64: 3, 8, 24>}, {transform_indices = @transform_4, window_bounds = array<i64: 1, 8, 384>}]} {
    %c0 = arith.constant 0 : index
    %c0_0 = arith.constant 0 : index
    %0 = vector.load %arg1[%c0, %c0_0] : memref<5x384xf32, #tpu.memory_space<vmem>>, vector<5x384xf32>
    %1 = vector.extract_strided_slice %0 {offsets = [0, 0], sizes = [1, 384], strides = [1, 1]} : vector<5x384xf32> to vector<1x384xf32>
    %2 = vector.shape_cast %1 : vector<1x384xf32> to vector<1x384xf32>
    %3 = vector.broadcast %2 : vector<1x384xf32> to vector<8x384xf32>
    %4 = vector.extract_strided_slice %0 {offsets = [1, 0], sizes = [1, 384], strides = [1, 1]} : vector<5x384xf32> to vector<1x384xf32>
    %cst = arith.constant 5.000000e-01 : f32
    %5 = vector.broadcast %cst : f32 to vector<1x384xf32>
    %6 = arith.cmpf ogt, %4, %5 : vector<1x384xf32>
    %7 = vector.extract_strided_slice %0 {offsets = [2, 0], sizes = [1, 384], strides = [1, 1]} : vector<5x384xf32> to vector<1x384xf32>
    %cst_1 = arith.constant 5.000000e-01 : f32
    %8 = vector.broadcast %cst_1 : f32 to vector<1x384xf32>
    %9 = arith.cmpf ogt, %7, %8 : vector<1x384xf32>
    %10 = vector.extract_strided_slice %0 {offsets = [3, 0], sizes = [1, 384], strides = [1, 1]} : vector<5x384xf32> to vector<1x384xf32>
    %cst_2 = arith.constant 5.000000e-01 : f32
    %11 = vector.broadcast %cst_2 : f32 to vector<1x384xf32>
    %12 = arith.cmpf ogt, %10, %11 : vector<1x384xf32>
    %13 = vector.extract_strided_slice %0 {offsets = [4, 0], sizes = [1, 384], strides = [1, 1]} : vector<5x384xf32> to vector<1x384xf32>
    %cst_3 = arith.constant 5.000000e-01 : f32
    %14 = vector.broadcast %cst_3 : f32 to vector<1x384xf32>
    %15 = arith.cmpf ogt, %13, %14 : vector<1x384xf32>
    %c0_4 = arith.constant 0 : index
    %c0_5 = arith.constant 0 : index
    %c0_6 = arith.constant 0 : index
    %16 = vector.load %arg2[%c0_4, %c0_5, %c0_6] : memref<1x8x384xf32, #tpu.memory_space<vmem>>, vector<1x8x384xf32>
    %17 = vector.shape_cast %16 : vector<1x8x384xf32> to vector<8x384xf32>
    %c18_i32 = arith.constant 18 : i32
    %18 = tpu.dynamic_rotate %17 by %c18_i32 dim 1 : vector<8x384xf32>, i32 -> vector<8x384xf32>
    %c1_i32 = arith.constant 1 : i32
    %19 = tpu.dynamic_rotate %18 by %c1_i32 dim 1 : vector<8x384xf32>, i32 -> vector<8x384xf32>
    %c383_i32 = arith.constant 383 : i32
    %20 = tpu.dynamic_rotate %18 by %c383_i32 dim 1 : vector<8x384xf32>, i32 -> vector<8x384xf32>
    %21 = tpu.concatenate %19, %18, %20 in 0 : vector<8x384xf32>, vector<8x384xf32>, vector<8x384xf32> -> vector<24x384xf32>
    %c0_7 = arith.constant 0 : index
    %c0_8 = arith.constant 0 : index
    %c0_9 = arith.constant 0 : index
    %22 = vector.load %arg3[%c0_7, %c0_8, %c0_9] : memref<3x8x24xf32, #tpu.memory_space<vmem>>, vector<1x8x24xf32>
    %23 = vector.shape_cast %22 : vector<1x8x24xf32> to vector<8x24xf32>
    %cst_10 = arith.constant dense<0.000000e+00> : vector<8x384xf32>
    %24 = tpu.matmul %23, %21, %cst_10 {dimension_numbers = #tpu.dot_dimension_numbers<[1], [0], [0], [1], [0, 0, 1, 1], [], []>} : vector<8x24xf32>, vector<24x384xf32>, vector<8x384xf32> -> vector<8x384xf32>
    %c1_i32_11 = arith.constant 1 : i32
    %25 = tpu.dynamic_rotate %17 by %c1_i32_11 dim 1 : vector<8x384xf32>, i32 -> vector<8x384xf32>
    %c383_i32_12 = arith.constant 383 : i32
    %26 = tpu.dynamic_rotate %17 by %c383_i32_12 dim 1 : vector<8x384xf32>, i32 -> vector<8x384xf32>
    %27 = tpu.concatenate %25, %17, %26 in 0 : vector<8x384xf32>, vector<8x384xf32>, vector<8x384xf32> -> vector<24x384xf32>
    %c1 = arith.constant 1 : index
    %c0_13 = arith.constant 0 : index
    %c0_14 = arith.constant 0 : index
    %28 = vector.load %arg3[%c1, %c0_13, %c0_14] : memref<3x8x24xf32, #tpu.memory_space<vmem>>, vector<1x8x24xf32>
    %29 = vector.shape_cast %28 : vector<1x8x24xf32> to vector<8x24xf32>
    %cst_15 = arith.constant dense<0.000000e+00> : vector<8x384xf32>
    %30 = tpu.matmul %29, %27, %cst_15 {dimension_numbers = #tpu.dot_dimension_numbers<[1], [0], [0], [1], [0, 0, 1, 1], [], []>} : vector<8x24xf32>, vector<24x384xf32>, vector<8x384xf32> -> vector<8x384xf32>
    %31 = arith.addf %24, %30 : vector<8x384xf32>
    %c366_i32 = arith.constant 366 : i32
    %32 = tpu.dynamic_rotate %17 by %c366_i32 dim 1 : vector<8x384xf32>, i32 -> vector<8x384xf32>
    %c1_i32_16 = arith.constant 1 : i32
    %33 = tpu.dynamic_rotate %32 by %c1_i32_16 dim 1 : vector<8x384xf32>, i32 -> vector<8x384xf32>
    %c383_i32_17 = arith.constant 383 : i32
    %34 = tpu.dynamic_rotate %32 by %c383_i32_17 dim 1 : vector<8x384xf32>, i32 -> vector<8x384xf32>
    %35 = tpu.concatenate %33, %32, %34 in 0 : vector<8x384xf32>, vector<8x384xf32>, vector<8x384xf32> -> vector<24x384xf32>
    %c2 = arith.constant 2 : index
    %c0_18 = arith.constant 0 : index
    %c0_19 = arith.constant 0 : index
    %36 = vector.load %arg3[%c2, %c0_18, %c0_19] : memref<3x8x24xf32, #tpu.memory_space<vmem>>, vector<1x8x24xf32>
    %37 = vector.shape_cast %36 : vector<1x8x24xf32> to vector<8x24xf32>
    %cst_20 = arith.constant dense<0.000000e+00> : vector<8x384xf32>
    %38 = tpu.matmul %37, %35, %cst_20 {dimension_numbers = #tpu.dot_dimension_numbers<[1], [0], [0], [1], [0, 0, 1, 1], [], []>} : vector<8x24xf32>, vector<24x384xf32>, vector<8x384xf32> -> vector<8x384xf32>
    %39 = arith.addf %31, %38 : vector<8x384xf32>
    %40 = arith.mulf %39, %3 : vector<8x384xf32>
    %cst_21 = arith.constant dense<0.000000e+00> : vector<8xf32>
    %41 = vector.multi_reduction <add>, %40, %cst_21 [1] : vector<8x384xf32> to vector<8xf32>
    %42 = vector.shape_cast %41 : vector<8xf32> to vector<8x1xf32>
    %43 = arith.mulf %39, %40 : vector<8x384xf32>
    %cst_22 = arith.constant dense<0.000000e+00> : vector<8xf32>
    %44 = vector.multi_reduction <add>, %43, %cst_22 [1] : vector<8x384xf32> to vector<8xf32>
    %45 = vector.shape_cast %44 : vector<8xf32> to vector<8x1xf32>
    %cst_23 = arith.constant 3.906250e-03 : f32
    %46 = vector.broadcast %cst_23 : f32 to vector<8x1xf32>
    %47 = arith.mulf %42, %46 : vector<8x1xf32>
    %cst_24 = arith.constant 3.906250e-03 : f32
    %48 = vector.broadcast %cst_24 : f32 to vector<8x1xf32>
    %49 = arith.mulf %45, %48 : vector<8x1xf32>
    %50 = arith.mulf %47, %47 : vector<8x1xf32>
    %51 = arith.subf %49, %50 : vector<8x1xf32>
    %cst_25 = arith.constant 0.000000e+00 : f32
    %52 = vector.broadcast %cst_25 : f32 to vector<8x1xf32>
    %53 = arith.maximumf %51, %52 : vector<8x1xf32>
    %54 = vector.broadcast %47 : vector<8x1xf32> to vector<8x384xf32>
    %55 = arith.subf %39, %54 : vector<8x384xf32>
    %cst_26 = arith.constant 9.99999974E-6 : f32
    %56 = vector.broadcast %cst_26 : f32 to vector<8x1xf32>
    %57 = arith.addf %53, %56 : vector<8x1xf32>
    %58 = math.rsqrt %57 : vector<8x1xf32>
    %59 = vector.broadcast %58 : vector<8x1xf32> to vector<8x384xf32>
    %60 = arith.mulf %55, %59 : vector<8x384xf32>
    %cst_27 = arith.constant 0.000000e+00 : f32
    %61 = vector.broadcast %cst_27 : f32 to vector<8x384xf32>
    %62 = arith.maximumf %60, %61 : vector<8x384xf32>
    %c382_i32 = arith.constant 382 : i32
    %63 = tpu.dynamic_rotate %62 by %c382_i32 dim 1 : vector<8x384xf32>, i32 -> vector<8x384xf32>
    %64 = vector.shape_cast %6 : vector<1x384xi1> to vector<1x384xi1>
    %65 = vector.broadcast %64 : vector<1x384xi1> to vector<8x384xi1>
    %66 = arith.select %65, %63, %62 : vector<8x384xi1>, vector<8x384xf32>
    %c2_i32 = arith.constant 2 : i32
    %67 = tpu.dynamic_rotate %66 by %c2_i32 dim 1 : vector<8x384xf32>, i32 -> vector<8x384xf32>
    %68 = vector.shape_cast %9 : vector<1x384xi1> to vector<1x384xi1>
    %69 = vector.broadcast %68 : vector<1x384xi1> to vector<8x384xi1>
    %70 = arith.select %69, %67, %66 : vector<8x384xi1>, vector<8x384xf32>
    %c348_i32 = arith.constant 348 : i32
    %71 = tpu.dynamic_rotate %70 by %c348_i32 dim 1 : vector<8x384xf32>, i32 -> vector<8x384xf32>
    %72 = vector.shape_cast %12 : vector<1x384xi1> to vector<1x384xi1>
    %73 = vector.broadcast %72 : vector<1x384xi1> to vector<8x384xi1>
    %74 = arith.select %73, %71, %70 : vector<8x384xi1>, vector<8x384xf32>
    %c36_i32 = arith.constant 36 : i32
    %75 = tpu.dynamic_rotate %74 by %c36_i32 dim 1 : vector<8x384xf32>, i32 -> vector<8x384xf32>
    %76 = vector.shape_cast %15 : vector<1x384xi1> to vector<1x384xi1>
    %77 = vector.broadcast %76 : vector<1x384xi1> to vector<8x384xi1>
    %78 = arith.select %77, %75, %74 : vector<8x384xi1>, vector<8x384xf32>
    %c18_i32_28 = arith.constant 18 : i32
    %79 = tpu.dynamic_rotate %78 by %c18_i32_28 dim 1 : vector<8x384xf32>, i32 -> vector<8x384xf32>
    %c1_i32_29 = arith.constant 1 : i32
    %80 = tpu.dynamic_rotate %79 by %c1_i32_29 dim 1 : vector<8x384xf32>, i32 -> vector<8x384xf32>
    %c383_i32_30 = arith.constant 383 : i32
    %81 = tpu.dynamic_rotate %79 by %c383_i32_30 dim 1 : vector<8x384xf32>, i32 -> vector<8x384xf32>
    %82 = tpu.concatenate %80, %79, %81 in 0 : vector<8x384xf32>, vector<8x384xf32>, vector<8x384xf32> -> vector<24x384xf32>
    %c0_31 = arith.constant 0 : index
    %c0_32 = arith.constant 0 : index
    %c0_33 = arith.constant 0 : index
    %83 = vector.load %arg4[%c0_31, %c0_32, %c0_33] : memref<3x8x24xf32, #tpu.memory_space<vmem>>, vector<1x8x24xf32>
    %84 = vector.shape_cast %83 : vector<1x8x24xf32> to vector<8x24xf32>
    %cst_34 = arith.constant dense<0.000000e+00> : vector<8x384xf32>
    %85 = tpu.matmul %84, %82, %cst_34 {dimension_numbers = #tpu.dot_dimension_numbers<[1], [0], [0], [1], [0, 0, 1, 1], [], []>} : vector<8x24xf32>, vector<24x384xf32>, vector<8x384xf32> -> vector<8x384xf32>
    %c1_i32_35 = arith.constant 1 : i32
    %86 = tpu.dynamic_rotate %78 by %c1_i32_35 dim 1 : vector<8x384xf32>, i32 -> vector<8x384xf32>
    %c383_i32_36 = arith.constant 383 : i32
    %87 = tpu.dynamic_rotate %78 by %c383_i32_36 dim 1 : vector<8x384xf32>, i32 -> vector<8x384xf32>
    %88 = tpu.concatenate %86, %78, %87 in 0 : vector<8x384xf32>, vector<8x384xf32>, vector<8x384xf32> -> vector<24x384xf32>
    %c1_37 = arith.constant 1 : index
    %c0_38 = arith.constant 0 : index
    %c0_39 = arith.constant 0 : index
    %89 = vector.load %arg4[%c1_37, %c0_38, %c0_39] : memref<3x8x24xf32, #tpu.memory_space<vmem>>, vector<1x8x24xf32>
    %90 = vector.shape_cast %89 : vector<1x8x24xf32> to vector<8x24xf32>
    %cst_40 = arith.constant dense<0.000000e+00> : vector<8x384xf32>
    %91 = tpu.matmul %90, %88, %cst_40 {dimension_numbers = #tpu.dot_dimension_numbers<[1], [0], [0], [1], [0, 0, 1, 1], [], []>} : vector<8x24xf32>, vector<24x384xf32>, vector<8x384xf32> -> vector<8x384xf32>
    %92 = arith.addf %85, %91 : vector<8x384xf32>
    %c366_i32_41 = arith.constant 366 : i32
    %93 = tpu.dynamic_rotate %78 by %c366_i32_41 dim 1 : vector<8x384xf32>, i32 -> vector<8x384xf32>
    %c1_i32_42 = arith.constant 1 : i32
    %94 = tpu.dynamic_rotate %93 by %c1_i32_42 dim 1 : vector<8x384xf32>, i32 -> vector<8x384xf32>
    %c383_i32_43 = arith.constant 383 : i32
    %95 = tpu.dynamic_rotate %93 by %c383_i32_43 dim 1 : vector<8x384xf32>, i32 -> vector<8x384xf32>
    %96 = tpu.concatenate %94, %93, %95 in 0 : vector<8x384xf32>, vector<8x384xf32>, vector<8x384xf32> -> vector<24x384xf32>
    %c2_44 = arith.constant 2 : index
    %c0_45 = arith.constant 0 : index
    %c0_46 = arith.constant 0 : index
    %97 = vector.load %arg4[%c2_44, %c0_45, %c0_46] : memref<3x8x24xf32, #tpu.memory_space<vmem>>, vector<1x8x24xf32>
    %98 = vector.shape_cast %97 : vector<1x8x24xf32> to vector<8x24xf32>
    %cst_47 = arith.constant dense<0.000000e+00> : vector<8x384xf32>
    %99 = tpu.matmul %98, %96, %cst_47 {dimension_numbers = #tpu.dot_dimension_numbers<[1], [0], [0], [1], [0, 0, 1, 1], [], []>} : vector<8x24xf32>, vector<24x384xf32>, vector<8x384xf32> -> vector<8x384xf32>
    %100 = arith.addf %92, %99 : vector<8x384xf32>
    %101 = arith.mulf %100, %3 : vector<8x384xf32>
    %cst_48 = arith.constant dense<0.000000e+00> : vector<8xf32>
    %102 = vector.multi_reduction <add>, %101, %cst_48 [1] : vector<8x384xf32> to vector<8xf32>
    %103 = vector.shape_cast %102 : vector<8xf32> to vector<8x1xf32>
    %104 = arith.mulf %100, %101 : vector<8x384xf32>
    %cst_49 = arith.constant dense<0.000000e+00> : vector<8xf32>
    %105 = vector.multi_reduction <add>, %104, %cst_49 [1] : vector<8x384xf32> to vector<8xf32>
    %106 = vector.shape_cast %105 : vector<8xf32> to vector<8x1xf32>
    %cst_50 = arith.constant 3.906250e-03 : f32
    %107 = vector.broadcast %cst_50 : f32 to vector<8x1xf32>
    %108 = arith.mulf %103, %107 : vector<8x1xf32>
    %cst_51 = arith.constant 3.906250e-03 : f32
    %109 = vector.broadcast %cst_51 : f32 to vector<8x1xf32>
    %110 = arith.mulf %106, %109 : vector<8x1xf32>
    %111 = arith.mulf %108, %108 : vector<8x1xf32>
    %112 = arith.subf %110, %111 : vector<8x1xf32>
    %cst_52 = arith.constant 0.000000e+00 : f32
    %113 = vector.broadcast %cst_52 : f32 to vector<8x1xf32>
    %114 = arith.maximumf %112, %113 : vector<8x1xf32>
    %115 = vector.broadcast %108 : vector<8x1xf32> to vector<8x384xf32>
    %116 = arith.subf %100, %115 : vector<8x384xf32>
    %cst_53 = arith.constant 9.99999974E-6 : f32
    %117 = vector.broadcast %cst_53 : f32 to vector<8x1xf32>
    %118 = arith.addf %114, %117 : vector<8x1xf32>
    %119 = math.rsqrt %118 : vector<8x1xf32>
    %120 = vector.broadcast %119 : vector<8x1xf32> to vector<8x384xf32>
    %121 = arith.mulf %116, %120 : vector<8x384xf32>
    %122 = arith.addf %17, %121 : vector<8x384xf32>
    %c382_i32_54 = arith.constant 382 : i32
    %123 = tpu.dynamic_rotate %122 by %c382_i32_54 dim 1 : vector<8x384xf32>, i32 -> vector<8x384xf32>
    %124 = vector.shape_cast %6 : vector<1x384xi1> to vector<1x384xi1>
    %125 = vector.broadcast %124 : vector<1x384xi1> to vector<8x384xi1>
    %126 = arith.select %125, %123, %122 : vector<8x384xi1>, vector<8x384xf32>
    %c2_i32_55 = arith.constant 2 : i32
    %127 = tpu.dynamic_rotate %126 by %c2_i32_55 dim 1 : vector<8x384xf32>, i32 -> vector<8x384xf32>
    %128 = vector.shape_cast %9 : vector<1x384xi1> to vector<1x384xi1>
    %129 = vector.broadcast %128 : vector<1x384xi1> to vector<8x384xi1>
    %130 = arith.select %129, %127, %126 : vector<8x384xi1>, vector<8x384xf32>
    %c348_i32_56 = arith.constant 348 : i32
    %131 = tpu.dynamic_rotate %130 by %c348_i32_56 dim 1 : vector<8x384xf32>, i32 -> vector<8x384xf32>
    %132 = vector.shape_cast %12 : vector<1x384xi1> to vector<1x384xi1>
    %133 = vector.broadcast %132 : vector<1x384xi1> to vector<8x384xi1>
    %134 = arith.select %133, %131, %130 : vector<8x384xi1>, vector<8x384xf32>
    %c36_i32_57 = arith.constant 36 : i32
    %135 = tpu.dynamic_rotate %134 by %c36_i32_57 dim 1 : vector<8x384xf32>, i32 -> vector<8x384xf32>
    %136 = vector.shape_cast %15 : vector<1x384xi1> to vector<1x384xi1>
    %137 = vector.broadcast %136 : vector<1x384xi1> to vector<8x384xi1>
    %138 = arith.select %137, %135, %134 : vector<8x384xi1>, vector<8x384xf32>
    %c0_58 = arith.constant 0 : index
    %c0_59 = arith.constant 0 : index
    %c0_60 = arith.constant 0 : index
    %139 = vector.load %arg5[%c0_58, %c0_59, %c0_60] : memref<1x8x384xf32, #tpu.memory_space<vmem>>, vector<1x8x384xf32>
    %140 = vector.shape_cast %139 : vector<1x8x384xf32> to vector<8x384xf32>
    %141 = vector.shape_cast %138 : vector<8x384xf32> to vector<1x8x384xf32>
    tpu.vector_store %arg5[%c0_58, %c0_59, %c0_60], %141 {strides = array<i32>} : memref<1x8x384xf32, #tpu.memory_space<vmem>>, vector<1x8x384xf32>,
    return
  }
  func.func @transform_0(%arg0: i32) -> (i32, i32) {
    %c0_i32 = arith.constant 0 : i32
    %c0_i32_0 = arith.constant 0 : i32
    %c0_i32_1 = arith.constant 0 : i32
    return %c0_i32, %c0_i32_0 : i32, i32
  }
  func.func @transform_1(%arg0: i32) -> (i32, i32, i32) {
    %c0_i32 = arith.constant 0 : i32
    %c0_i32_0 = arith.constant 0 : i32
    %c0_i32_1 = arith.constant 0 : i32
    return %arg0, %c0_i32, %c0_i32_0 : i32, i32, i32
  }
  func.func @transform_2(%arg0: i32) -> (i32, i32, i32) {
    %c0_i32 = arith.constant 0 : i32
    %c0_i32_0 = arith.constant 0 : i32
    %c0_i32_1 = arith.constant 0 : i32
    %c0_i32_2 = arith.constant 0 : i32
    return %c0_i32, %c0_i32_0, %c0_i32_1 : i32, i32, i32
  }
  func.func @transform_3(%arg0: i32) -> (i32, i32, i32) {
    %c0_i32 = arith.constant 0 : i32
    %c0_i32_0 = arith.constant 0 : i32
    %c0_i32_1 = arith.constant 0 : i32
    %c0_i32_2 = arith.constant 0 : i32
    return %c0_i32, %c0_i32_0, %c0_i32_1 : i32, i32, i32
  }
  func.func @transform_4(%arg0: i32) -> (i32, i32, i32) {
    %c0_i32 = arith.constant 0 : i32
    %c0_i32_0 = arith.constant 0 : i32
    %c0_i32_1 = arith.constant 0 : i32
    return %arg0, %c0_i32, %c0_i32_0 : i32, i32, i32
  }
}

</mosaic_0001>

<bundles_post_ra>
// kernel: residual_block.1
= control target key start
LH: loop header
LB: loop body
LE: loop exit
PB: predicated region body
PF: predicated region fallthrough
CT: control target
= control target key end

     0   :  { %s1802_s15 = smov 0   ;;  %s2327_s0 = inlined_call_operand.vmem [shape: f32[5,384], index: 0, kind: input, shape index: {}]   ;;  %s2328_s1 = inlined_call_operand.vmem [shape: f32[2,8,384], index: 1, kind: input, shape index: {}]   ;;  %s2329_s2 = inlined_call_operand.vmem [shape: f32[3,8,24], index: 2, kind: input, shape index: {}]   ;;  %s2330_s3 = inlined_call_operand.vmem [shape: f32[3,8,24], index: 3, kind: input, shape index: {}]   ;;  %s2331_s4 = inlined_call_operand.vmem [shape: f32[2,8,384], index: 4, kind: output, shape index: {}]  }
   0x1 LB: > { %s1531_s16 = sadd.s32 4294967295, %s1763_s15   ;;  %p1535_p0 = scmp.ge.s32.totalorder %s1763_s15, 1  ;;  %s1763_s15 = sphi %s1802_s15, %s14_s15  }
   0x2   : > { %p162_p1 = scmp.lt.s32.totalorder %s1763_s15, 3 }
   0x4   : > { %p163_p2 = pnand %p1535_p0, %p162_p1 }
   0x5   : > { %p188_p3 = scmp.lt.s32.totalorder (!%p163_p2), %s1531_s16, 1  ;;  %s1765_s21 = smov (!%p163_p2), 18   ;;  %v201_v4 = vlaneseq (!%p163_p2)  ;;  %v1769_v6 = vmov (!%p163_p2), 0.0|0.0   ;;  %v1770_v7 = vmov (!%p163_p2), 0.0   ;;  %vm2334_vm1 = vmmov (!%p163_p2), 0   ;;  %v1538_v41 = vld [vmem:[%s2329_s2 + $0x8] sm:$0xff] (!%p163_p2) }
   0x6   : > { %166 = sbr.rel (%p163_p2) target bundleno = 2268 (0x8dc), region = 36  ;;  %s1766_s22 = smov (!%p163_p2), 110   ;;  %1638 = vmatprep.subr.bf16.mxu1 (!%p163_p2), %v1769_v6  ;;  %340 = vmatprep.mubr.f32.mxu0 (!%p163_p2), %v1770_v7  ;;  %vm2337_vm5 = vcmask (!%p163_p2), 195584   ;;  %v251_v57 = vld [vmem:[%s2329_s2] sm:$0xff] (!%p163_p2) }
   0x7   : > { %s1767_s23 = smov (!%p163_p2), 1   ;;  %s1768_s24 = smov (!%p163_p2), 127   ;;  %v1844_v5 = vand.u32 (!%p163_p2), 127, %v201_v4  ;;  %1586 = vmatprep.mubr.msk.f32.mxu1 (!%p163_p2), %vm2334_vm1, %v1770_v7 }
   0x8   : > { %s1772_s11 = smov (!%p163_p2), 126   ;;  %s1774_s12 = smov (!%p163_p2), 2  }
   0x9   : > { %vm227_vm0 = vcmp.lt.s32.totalorder (!%p163_p2), %v1844_v5, 18  ;;  %vm567_vm2 = vcmp.lt.s32.totalorder (!%p163_p2), %v1844_v5, 110  ;;  %vm2340_vm3 = vcmp.lt.s32.totalorder (!%p163_p2), %v1844_v5, 1  ;;  %vm2338_vm4 = vcmp.lt.s32.totalorder (!%p163_p2), %v1844_v5, 127  ;;  %s1775_s13 = smov (!%p163_p2), 92   ;;  %s1776_s14 = smov (!%p163_p2), 36  }
   0xa   : > { %vm2333_vm9 = vcmp.lt.s32.totalorder (!%p163_p2), %v1844_v5, 126  ;;  %vm2332_vm13 = vcmp.lt.s32.totalorder (!%p163_p2), %v1844_v5, 2 }
   0xd   : > { %s2402_s16 = smov (!%p188_p3, %s1531_s16), 1 }
   0xe   : > { %s1692_s17 = smul.u32 24, %s2402_s16 }
  0x10   : > { %s192_s20 = scalar_lea.vmem %s2328_s1, %s1692_s17  ;;  %s197_s26 = scalar_lea.vmem %s2331_s4, %s1692_s17 }
  0x11   : > { %v1818_v0 = vld [vmem:[%s192_s20 + $0x10] sm:$0xff]  ;;  %v1820_v1 = vld [vmem:[%s192_s20] sm:$0xff]  ;;  %v1826_v2 = vld [vmem:[%s192_s20 + $0x8] sm:$0xff] }
  0x12   : > { %223 = vrot.lane.b32.xlu1 %v1818_v0, %s1765_s21  ;;  %219 = vrot.lane.b32.xlu0 %v1820_v1, %s1765_s21  ;;  %v1713_v3 = vpack.i.bf16 %v1826_v2, %v1820_v1 }
  0x16   : > { %221 = vrot.lane.b32.xlu0 %v1826_v2, %s1765_s21  ;;  %561 = vrot.lane.b32.xlu1 %v1820_v1, %s1766_s22 }
  0x1a   : > { %565 = vrot.lane.b32.xlu1 %v1818_v0, %s1766_s22  ;;  %563 = vrot.lane.b32.xlu0 %v1826_v2, %s1766_s22 }
  0x1e   : > { %1714 = vrot.lane.b32.xlu0 %v1713_v3, %s1767_s23 }
  0x22   : > { %263 = vrot.lane.b32.xlu0 %v1826_v2, %s1768_s24 }
  0x26   : > { %261 = vrot.lane.b32.xlu0 %v1820_v1, %s1768_s24 }
  0x84   : > { %v224_v8 = vpop.permute.xlu1 %223  ;;  %v220_v9 = vpop.permute.xlu0 %219 }
  0x85   : > { %v1853_v10 = vsel %vm227_vm0, %v224_v8, %v220_v9 }
  0x86   : > { %v1718_v11 = vpack.i.bf16 %v1853_v10, %v1818_v0 }
  0x88   : > { %1719 = vrot.lane.b32.xlu1 %v1718_v11, %s1767_s23  ;;  %v222_v12 = vpop.permute.xlu0 %221  ;;  %v562_v13 = vpop.permute.xlu1 %561 }
  0x89   : > { %v1860_v14 = vsel %vm227_vm0, %v220_v9, %v222_v12  ;;  %v1866_v15 = vsel %vm227_vm0, %v222_v12, %v224_v8 }
  0x8a   : > { %243 = vrot.lane.b32.xlu0 %v1860_v14, %s1768_s24  ;;  %v1723_v18 = vpack.i.bf16 %v1866_v15, %v1860_v14 }
  0x8c   : > { %265 = vrot.lane.b32.xlu1 %v1818_v0, %s1768_s24  ;;  %v566_v16 = vpop.permute.xlu1 %565  ;;  %v564_v17 = vpop.permute.xlu0 %563 }
  0x8d   : > { %v1877_v19 = vsel %vm567_vm2, %v566_v16, %v562_v13  ;;  %v1885_v23 = vsel %vm567_vm2, %v564_v17, %v566_v16  ;;  %v1889_v24 = vsel %vm567_vm2, %v562_v13, %v564_v17 }
  0x8e   : > { %241 = vrot.lane.b32.xlu0 %v1853_v10, %s1768_s24  ;;  %v1728_v27 = vpack.i.bf16 %v1885_v23, %v1889_v24 }
  0x90   : > { %1724 = vrot.lane.b32.xlu1 %v1723_v18, %s1767_s23  ;;  %v1715_v20 = vpop.permute.xlu0 %1714  ;;  %v1979_v18 = vshrl.u32 %v201_v4, 7 }
  0x91   : > { %v1717_v21 = vunpack.i.h.bf16 %v1715_v20  ;;  %v1716_v22 = vunpack.i.l.bf16 %v1715_v20  ;;  %v198_v20 = vld [vmem:[%s2327_s0] sm:$0x1f] }
  0x92   : > { %575 = vrot.lane.b32.xlu0 %v1877_v19, %s1767_s23  ;;  %vm213_vm6 = vcmp.gt.f32.partialorder %v198_v20, 0.5 }
  0x93   : > { %v259_v25 = vsel %vm2340_vm3, %v1716_v22, %v1717_v21 }
  0x94   : > { %245 = vrot.lane.b32.xlu1 %v1866_v15, %s1768_s24  ;;  %v1634_v26 = vpack.c.bf16 %v1826_v2, %v259_v25  ;;  %v264_v28 = vpop.permute.xlu0 %263 }
  0x96   : > { %584 = vrot.lane.b32.xlu0 %v1877_v19, %s1768_s24  ;;  %1635 = vmatprep.subr.bf16.mxu0 %v1634_v26 }
  0x98   : > { %1729 = vrot.lane.b32.xlu1 %v1728_v27, %s1767_s23  ;;  %v262_v29 = vpop.permute.xlu0 %261 }
  0x99   : > { %v268_v40 = vsel %vm2338_vm4, %v262_v29, %v264_v28 }
  0x9c   : > { %582 = vrot.lane.b32.xlu1 %v1885_v23, %s1768_s24 }
  0xa0   : > { %580 = vrot.lane.b32.xlu1 %v1889_v24, %s1768_s24 }
  0xfa   : > { %v1720_v30 = vpop.permute.xlu1 %1719 }
  0xfb   : > { %v1721_v31 = vunpack.i.l.bf16 %v1720_v30  ;;  %v1722_v42 = vunpack.i.h.bf16 %v1720_v30 }
  0xfc   : > { %v244_v34 = vpop.permute.xlu0 %243 }
  0xfd   : > { %v260_v32 = vsel %vm2340_vm3, %v1721_v31, %v1716_v22  ;;  %v258_v33 = vsel %vm2340_vm3, %v1717_v21, %v1721_v31  ;;  %v199_v21 = vld [vmem:[%s2327_s0 + $0x8] sm:$0x1f]  ;;  %v200_v22 = vld [vmem:[%s2327_s0 + $0x10] sm:$0x1f] }
  0xfe   : > { %v266_v35 = vpop.permute.xlu1 %265  ;;  %v1636_v36 = vpack.c.bf16 %v1820_v1, %v260_v32  ;;  %v1639_v37 = vpack.c.bf16 %v1818_v0, %v258_v33  ;;  %vm214_vm7 = vcmp.gt.f32.partialorder %v199_v21, 0.5  ;;  %vm215_vm8 = vcmp.gt.f32.partialorder %v200_v22, 0.5 }
  0xff   : > { %v267_v38 = vsel %vm2338_vm4, %v264_v28, %v266_v35  ;;  %v269_v45 = vsel %vm2338_vm4, %v266_v35, %v262_v29 }
 0x100   : > { %1637 = vmatpush1.bf16.msra.mxu0 %v1636_v36  ;;  %1640 = vmatpush3.bf16.msra.mxu1 %v1639_v37  ;;  %v242_v46 = vpop.permute.xlu0 %241 }
 0x101   : > { %280 = vmatprep.subr.mxu0 %v267_v38  ;;  %1584 = vmatprep.subr.mxu1 %v1770_v7  ;;  %v249_v61 = vsel %vm2338_vm4, %v242_v46, %v244_v34 }
 0x102   : > { %v1725_v39 = vpop.permute.xlu1 %1724 }
 0x103   : > { %v1727_v43 = vunpack.i.h.bf16 %v1725_v39  ;;  %v1726_v44 = vunpack.i.l.bf16 %v1725_v39 }
 0x104   : > { %281 = vmatpush1.msra.mxu0 %v268_v40  ;;  %1585 = vmatpush3.msra.mxu1 %v269_v45  ;;  %v576_v55 = vpop.permute.xlu0 %575 }
 0x105   : > { %v240_v47 = vsel %vm2340_vm3, %v1727_v43, %v1722_v42  ;;  %v238_v48 = vsel %vm2340_vm3, %v1726_v44, %v1727_v43  ;;  %1587 = vmatmul.mubr.msk.f32.vlgmr.msra.gmra.mrb[0].mxu1 %vm2337_vm5, %v1538_v41  ;;  %1539 = vmatmul.mubr.msk.f32.vlgmr.msra.gmra.mrb[0].mxu0 %vm2337_vm5, %v1538_v41  ;;  %v239_v49 = vsel %vm2340_vm3, %v1722_v42, %v1726_v44 }
 0x106   : > { %v1643_v50 = vpack.c.bf16 %v1853_v10, %v240_v47  ;;  %v1646_v51 = vpack.c.bf16 %v1866_v15, %v238_v48  ;;  %v246_v52 = vpop.permute.xlu1 %245  ;;  %1645 = vmatprep.subr.bf16.mxu1 %v1769_v6  ;;  %v1641_v53 = vpack.c.bf16 %v1860_v14, %v239_v49  ;;  %1595 = vmatprep.mubr.msk.f32.mxu1 %vm2334_vm1, %v1770_v7  ;;  %v1543_v15 = vld [vmem:[%s2329_s2 + $0x10] sm:$0xff] }
 0x107   : > { %484 = vmatprep.mubr.f32.mxu0 %v1770_v7  ;;  %v248_v54 = vsel %vm2338_vm4, %v244_v34, %v246_v52  ;;  %v250_v58 = vsel %vm2338_vm4, %v246_v52, %v242_v46 }
 0x108   : > { %1642 = vmatprep.subr.bf16.mxu0 %v1641_v53  ;;  %1647 = vmatpush3.bf16.msra.mxu1 %v1646_v51  ;;  %v585_v12 = vpop.permute.xlu0 %584 }
 0x109   : > { %1644 = vmatpush1.bf16.msra.mxu0 %v1643_v50  ;;  %1593 = vmatprep.subr.mxu1 %v1770_v7 }
 0x10a   : > { %v1730_v56 = vpop.permute.xlu1 %1729  ;;  %424 = vmatprep.subr.mxu0 %v248_v54 }
 0x10b   : > { %v1732_v59 = vunpack.i.h.bf16 %v1730_v56  ;;  %v1731_v60 = vunpack.i.l.bf16 %v1730_v56 }
 0x10c   : > { %1594 = vmatpush3.msra.mxu1 %v250_v58  ;;  %v1773_v58 = vmov 0  }
 0x10d   : > { %v577_v62 = vsel %vm2340_vm3, %v1732_v59, %v576_v55  ;;  %v579_v63 = vsel %vm2340_vm3, %v576_v55, %v1731_v60  ;;  %425 = vmatpush1.msra.mxu0 %v249_v61  ;;  %1596 = vmatmul.mubr.msk.f32.vlgmr.msra.gmra.mrb[0].mxu1 %vm2337_vm5, %v251_v57  ;;  %v578_v3 = vsel %vm2340_vm3, %v1731_v60, %v1732_v59  ;;  %v2004_v59 = vsel %vm213_vm6, 1, %v1773_v58 }
 0x10e   : > { %v1650_v8 = vpack.c.bf16 %v1889_v24, %v579_v63  ;;  %v1653_v9 = vpack.c.bf16 %v1877_v19, %v577_v62  ;;  %v583_v10 = vpop.permute.xlu1 %582  ;;  %1541 = vmatmul.mubr.msk.f32.vlgmr.msra.gmra.mrb[0].mxu0 %vm2337_vm5, %v251_v57  ;;  %1652 = vmatprep.subr.bf16.mxu1 %v1769_v6  ;;  %v1648_v11 = vpack.c.bf16 %v1885_v23, %v578_v3  ;;  %v203_v19 = vsub.s32 0, %v1979_v18 }
 0x10f   : > { %1604 = vmatprep.mubr.msk.f32.mxu1 %vm2334_vm1, %v1770_v7  ;;  %658 = vmatprep.mubr.f32.mxu0 %v1770_v7  ;;  %v586_v13 = vsel %vm2338_vm4, %v583_v10, %v585_v12  ;;  %v783_v57 = vsub.s32 1, %v1979_v18  ;;  %v2007_v61 = vsel %vm215_vm8, 1, %v1773_v58  ;;  %v2009_v62 = vsel %vm214_vm7, 1, %v1773_v58 }
 0x110   : > { %1649 = vmatprep.subr.bf16.mxu0 %v1648_v11  ;;  %1654 = vmatpush3.bf16.msra.mxu1 %v1653_v9  ;;  %v1991_v23 = vrot.slane %v198_v20, %v203_v19  ;;  %v1993_v24 = vrot.slane %v199_v21, %v203_v19  ;;  %v1995_v4 = vrot.slane %v200_v22, %v203_v19  ;;  %v811_v21 = vsub.s32 2, %v1979_v18 }
 0x111   : > { %1651 = vmatpush1.bf16.msra.mxu0 %v1650_v8  ;;  %1602 = vmatprep.subr.mxu1 %v1770_v7  ;;  %v784_v60 = vrot.slane %v2004_v59, %v783_v57  ;;  %v792_v3 = vrot.slane %v2007_v61, %v783_v57  ;;  %v788_v8 = vrot.slane %v2009_v62, %v783_v57  ;;  %vm2336_vm7 = vcmp.lt.s32.totalorder %v1844_v5, 92 }
 0x112   : > { %v581_v14 = vpop.permute.xlu1 %580  ;;  %598 = vmatprep.subr.mxu0 %v586_v13  ;;  %v812_v22 = vrot.slane %v2004_v59, %v811_v21 }
 0x113   : > { %v587_v16 = vsel %vm2338_vm4, %v581_v14, %v583_v10  ;;  %v588_v17 = vsel %vm2338_vm4, %v585_v12, %v581_v14  ;;  %vm2012_vm10 = vcmp.eq.s32.totalorder %v784_v60, 1  ;;  %vm2023_vm11 = vcmp.eq.s32.totalorder %v792_v3, 1 }
 0x114   : > { %1603 = vmatpush3.msra.mxu1 %v588_v17  ;;  %vm2027_vm12 = vcmp.eq.s32.totalorder %v788_v8, 1  ;;  %vm2045_vm14 = vcmp.eq.s32.totalorder %v812_v22, 1  ;;  %v2362_v60 = vmov 0  ;;  %v2364_v8 = vmov 0 }
 0x115   : > { %599 = vmatpush1.msra.mxu0 %v587_v16  ;;  %1605 = vmatmul.mubr.msk.f32.vlgmr.msra.gmra.mrb[0].mxu1 %vm2337_vm5, %v1543_v15 }
 0x116   : > { %1544 = vmatmul.mubr.msk.f32.vlgmr.msra.gmra.mrb[0].mxu0 %vm2337_vm5, %v1543_v15  ;;  %1659 = vmatprep.subr.bf16.mxu1 %v1769_v6 }
 0x117   : > { %1613 = vmatprep.mubr.msk.f32.mxu1 %vm2334_vm1, %v1770_v7  ;;  %998 = vmatprep.mubr.f32.mxu0 %v1770_v7  ;;  %vm2339_vm1 = vcmp.lt.s32.totalorder %v1844_v5, 36 }
 0x1e8   : > { %v731_v25 = vpop.f32.mrb[0].mxu1 }
 0x1e9   : > { %v660_v26 = vpop.f32.mrb[0].mxu0  ;;  %v1606_v27 = vpop.f32.mrb[1].mxu1  ;;  %v740_v31 = vmul.f32 %v731_v25, %v1995_v4 }
 0x1ea   : > { %v738_v28 = vmul.f32 %v660_v26, %v1991_v23  ;;  %v662_v29 = vpop.f32.mrb[1].mxu0 }
 0x1eb   : > { %v739_v30 = vmul.f32 %v662_v29, %v1993_v24  ;;  %v747_v36 = vmul.f32 %v740_v31, %v731_v25 }
 0x1ec   : > { %v745_v32 = vmul.f32 %v738_v28, %v660_v26 }
 0x1ed   : > { %v746_v33 = vmul.f32 %v739_v30, %v662_v29  ;;  %v741_v34 = vadd.f32 %v739_v30, %v738_v28 }
 0x1ef   : > { %v742_v35 = vadd.f32 %v741_v34, %v740_v31  ;;  %v748_v37 = vadd.f32 %v746_v33, %v745_v32 }
 0x1f1   : > { %743 = vadd.xlane.f32.xlu0 %v742_v35  ;;  %v749_v38 = vadd.f32 %v748_v37, %v747_v36 }
 0x1f3   : > { %750 = vadd.xlane.f32.xlu1 %v749_v38 }
 0x27e   : > { %v744_v39 = vpop.xlane.xlu0 %743 }
 0x27f   : > { %v752_v40 = vmul.f32 0.00390625, %v744_v39  ;;  %v839_v39 = vsub.s32 3, %v1979_v18 }
 0x280   : > { %v751_v41 = vpop.xlane.xlu1 %750 }
 0x281   : > { %v753_v42 = vmul.f32 0.00390625, %v751_v41  ;;  %v754_v43 = vmul.f32 %v752_v40, %v752_v40  ;;  %v758_v47 = vsub.f32 %v662_v29, %v752_v40  ;;  %v757_v48 = vsub.f32 %v660_v26, %v752_v40 }
 0x282   : > { %v759_v52 = vsub.f32 %v731_v25, %v752_v40  ;;  %v816_v25 = vrot.slane %v2009_v62, %v811_v21  ;;  %v820_v29 = vrot.slane %v2007_v61, %v811_v21  ;;  %v840_v40 = vrot.slane %v2004_v59, %v839_v39 }
 0x283   : > { %v755_v44 = vsub.f32 %v753_v42, %v754_v43  ;;  %v848_v42 = vrot.slane %v2007_v61, %v839_v39  ;;  %v844_v43 = vrot.slane %v2009_v62, %v839_v39 }
 0x284   : > { %vm2049_vm15 = vcmp.eq.s32.totalorder %v816_v25, 1  ;;  %vm2066_vm6 = vcmp.eq.s32.totalorder %v820_v29, 1  ;;  %vm2076_vm8 = vcmp.eq.s32.totalorder %v840_v40, 1 }
 0x285   : > { %v756_v45 = vmax.f32 %v755_v44, 0.0 }
 0x287   : > { %v760_v46 = vadd.f32 1e-05, %v756_v45 }
 0x289   : > { %1753 = vrsqrt.f32 %v760_v46 }
 0x293   : > { %v1754_v49 = vpop.eup %1753 }
 0x294   : > { %v763_v50 = vmul.f32 %v1754_v49, %v758_v47  ;;  %v762_v51 = vmul.f32 %v1754_v49, %v757_v48  ;;  %v764_v55 = vmul.f32 %v1754_v49, %v759_v52 }
 0x296   : > { %v766_v53 = vmax.f32 %v763_v50, 0.0  ;;  %v765_v54 = vmax.f32 %v762_v51, 0.0  ;;  %v767_v56 = vmax.f32 %v764_v55, 0.0  ;;  %v867_v55 = vsub.s32 4, %v1979_v18 }
 0x298   : > { %770 = vrot.lane.b32.xlu1 %v766_v53, %s1772_s11  ;;  %768 = vrot.lane.b32.xlu0 %v765_v54, %s1772_s11  ;;  %v872_v57 = vrot.slane %v2009_v62, %v867_v55  ;;  %v876_v3 = vrot.slane %v2007_v61, %v867_v55  ;;  %v2366_v61 = vmov 0 }
 0x29a   : > { %vm2114_vm5 = vcmp.eq.s32.totalorder %v872_v57, 1  ;;  %vm2126_vm4 = vcmp.eq.s32.totalorder %v876_v3, 1  ;;  %v1546_v3 = vld [vmem:[%s2330_s3 + $0x8] sm:$0xff] }
 0x29b   : > { %v2365_v8 = vsel %vm2114_vm5, 4294967295, %v2364_v8  ;;  %v2367_v61 = vsel %vm2126_vm4, 4294967295, %v2366_v61 }
 0x29c   : > { %772 = vrot.lane.b32.xlu0 %v767_v56, %s1772_s11 }
 0x30a   : > { %v771_v9 = vpop.permute.xlu1 %770  ;;  %v769_v10 = vpop.permute.xlu0 %768 }
 0x30b   : > { %v776_v11 = vsel %vm2333_vm9, %v769_v10, %v771_v9 }
 0x30c   : > { %v796_v12 = vsel %vm2012_vm10, %v776_v11, %v765_v54 }
 0x30d   : > { %799 = vrot.lane.b32.xlu1 %v796_v12, %s1774_s12 }
 0x30e   : > { %v773_v15 = vpop.permute.xlu0 %772 }
 0x30f   : > { %v775_v16 = vsel %vm2333_vm9, %v771_v9, %v773_v15  ;;  %v777_v17 = vsel %vm2333_vm9, %v773_v15, %v769_v10  ;;  %vm2091_vm9 = vcmp.eq.s32.totalorder %v844_v43, 1 }
 0x310   : > { %v798_v19 = vsel %vm2023_vm11, %v777_v17, %v767_v56  ;;  %v797_v20 = vsel %vm2027_vm12, %v775_v16, %v766_v53  ;;  %v868_v56 = vrot.slane %v2004_v59, %v867_v55 }
 0x311   : > { %803 = vrot.lane.b32.xlu1 %v798_v19, %s1774_s12  ;;  %801 = vrot.lane.b32.xlu0 %v797_v20, %s1774_s12 }
 0x37f   : > { %v800_v26 = vpop.permute.xlu1 %799 }
 0x383   : > { %v804_v30 = vpop.permute.xlu1 %803  ;;  %v802_v31 = vpop.permute.xlu0 %801 }
 0x384   : > { %v808_v32 = vsel %vm2332_vm13, %v804_v30, %v800_v26  ;;  %v807_v33 = vsel %vm2332_vm13, %v800_v26, %v802_v31  ;;  %v806_v36 = vsel %vm2332_vm13, %v802_v31, %v804_v30  ;;  %vm2087_vm13 = vcmp.eq.s32.totalorder %v848_v42, 1 }
 0x385   : > { %v824_v34 = vsel %vm2045_vm14, %v808_v32, %v796_v12  ;;  %v825_v35 = vsel %vm2049_vm15, %v807_v33, %v797_v20  ;;  %v826_v38 = vsel %vm2066_vm6, %v806_v36, %v798_v19 }
 0x386   : > { %827 = vrot.lane.b32.xlu0 %v824_v34, %s1775_s13  ;;  %829 = vrot.lane.b32.xlu1 %v825_v35, %s1775_s13 }
 0x38a   : > { %831 = vrot.lane.b32.xlu0 %v826_v38, %s1775_s13 }
 0x3f8   : > { %v830_v44 = vpop.permute.xlu1 %829  ;;  %v828_v45 = vpop.permute.xlu0 %827 }
 0x3f9   : > { %v835_v46 = vsel %vm2336_vm7, %v828_v45, %v830_v44 }
 0x3fa   : > { %v852_v47 = vsel %vm2076_vm8, %v835_v46, %v824_v34 }
 0x3fb   : > { %855 = vrot.lane.b32.xlu1 %v852_v47, %s1776_s14 }
 0x3fc   : > { %v832_v50 = vpop.permute.xlu0 %831 }
 0x3fd   : > { %v834_v51 = vsel %vm2336_vm7, %v830_v44, %v832_v50  ;;  %v836_v52 = vsel %vm2336_vm7, %v832_v50, %v828_v45  ;;  %vm2109_vm7 = vcmp.eq.s32.totalorder %v868_v56, 1 }
 0x3fe   : > { %v854_v53 = vsel %vm2087_vm13, %v836_v52, %v826_v38  ;;  %v853_v54 = vsel %vm2091_vm9, %v834_v51, %v825_v35  ;;  %v2363_v60 = vsel %vm2109_vm7, 4294967295, %v2362_v60 }
 0x3ff   : > { %859 = vrot.lane.b32.xlu1 %v854_v53, %s1776_s14  ;;  %857 = vrot.lane.b32.xlu0 %v853_v54, %s1776_s14 }
 0x46d   : > { %v856_v58 = vpop.permute.xlu1 %855 }
 0x471   : > { %v860_v9 = vpop.permute.xlu1 %859  ;;  %v858_v10 = vpop.permute.xlu0 %857 }
 0x472   : > { %v864_v18 = vsel %vm2339_vm1, %v860_v9, %v856_v58  ;;  %v863_v59 = vsel %vm2339_vm1, %v856_v58, %v858_v10  ;;  %v862_v12 = vsel %vm2339_vm1, %v858_v10, %v860_v9 }
 0x473   : > { %v880_v62 = vsel %vm2109_vm7, %v864_v18, %v852_v47  ;;  %v881_v11 = vsel %vm2114_vm5, %v863_v59, %v853_v54  ;;  %v882_v15 = vsel %vm2126_vm4, %v862_v12, %v854_v53  ;;  %vm2379_vm5 = vcmask 195584  }
 0x474   : > { %883 = vrot.lane.b32.xlu0 %v880_v62, %s1765_s21  ;;  %885 = vrot.lane.b32.xlu1 %v881_v11, %s1765_s21  ;;  %v1733_v16 = vpack.i.bf16 %v881_v11, %v880_v62 }
 0x478   : > { %1219 = vrot.lane.b32.xlu1 %v880_v62, %s1766_s22  ;;  %887 = vrot.lane.b32.xlu0 %v882_v15, %s1765_s21 }
 0x47c   : > { %1223 = vrot.lane.b32.xlu1 %v882_v15, %s1766_s22  ;;  %1221 = vrot.lane.b32.xlu0 %v881_v11, %s1766_s22 }
 0x480   : > { %1734 = vrot.lane.b32.xlu0 %v1733_v16, %s1767_s23 }
 0x484   : > { %922 = vrot.lane.b32.xlu0 %v881_v11, %s1768_s24 }
 0x488   : > { %920 = vrot.lane.b32.xlu0 %v880_v62, %s1768_s24 }
 0x4e6   : > { %v886_v17 = vpop.permute.xlu1 %885  ;;  %v884_v19 = vpop.permute.xlu0 %883 }
 0x4e7   : > { %v2145_v20 = vsel %vm227_vm0, %v884_v19, %v886_v17 }
 0x4e8   : > { %903 = vrot.lane.b32.xlu0 %v2145_v20, %s1768_s24 }
 0x4ea   : > { %v1220_v21 = vpop.permute.xlu1 %1219  ;;  %v888_v22 = vpop.permute.xlu0 %887 }
 0x4eb   : > { %v2151_v25 = vsel %vm227_vm0, %v888_v22, %v884_v19  ;;  %v889_v32 = vsel %vm227_vm0, %v886_v17, %v888_v22  ;;  %vm2368_vm0 = vcmp.lt.s32.totalorder %v1844_v5, 127 }
 0x4ec   : > { %901 = vrot.lane.b32.xlu0 %v2151_v25, %s1768_s24  ;;  %v1738_v26 = vpack.i.bf16 %v2151_v25, %v882_v15  ;;  %v1743_v36 = vpack.i.bf16 %v889_v32, %v2145_v20  ;;  %vm2370_vm1 = vmmov %vm2368_vm0 }
 0x4ee   : > { %v1224_v29 = vpop.permute.xlu1 %1223  ;;  %1739 = vrot.lane.b32.xlu1 %v1738_v26, %s1767_s23  ;;  %v1222_v30 = vpop.permute.xlu0 %1221 }
 0x4ef   : > { %v2159_v31 = vsel %vm567_vm2, %v1224_v29, %v1220_v21  ;;  %v2174_v40 = vsel %vm567_vm2, %v1222_v30, %v1224_v29  ;;  %v2178_v42 = vsel %vm567_vm2, %v1220_v21, %v1222_v30  ;;  %vm2369_vm2 = vmmov %vm2368_vm0 }
 0x4f0   : > { %1232 = vrot.lane.b32.xlu0 %v2159_v31, %s1767_s23  ;;  %v1748_v43 = vpack.i.bf16 %v2174_v40, %v2178_v42 }
 0x4f2   : > { %924 = vrot.lane.b32.xlu1 %v882_v15, %s1768_s24  ;;  %v1735_v33 = vpop.permute.xlu0 %1734 }
 0x4f3   : > { %v1737_v34 = vunpack.i.h.bf16 %v1735_v33  ;;  %v1736_v35 = vunpack.i.l.bf16 %v1735_v33 }
 0x4f4   : > { %1241 = vrot.lane.b32.xlu0 %v2159_v31, %s1768_s24 }
 0x4f5   : > { %v918_v38 = vsel %vm2340_vm3, %v1736_v35, %v1737_v34 }
 0x4f6   : > { %1744 = vrot.lane.b32.xlu1 %v1743_v36, %s1767_s23  ;;  %v1655_v39 = vpack.c.bf16 %v881_v11, %v918_v38  ;;  %v923_v44 = vpop.permute.xlu0 %922 }
 0x4f8   : > { %1656 = vmatprep.subr.bf16.mxu0 %v1655_v39 }
 0x4fa   : > { %905 = vrot.lane.b32.xlu1 %v889_v32, %s1768_s24  ;;  %v921_v45 = vpop.permute.xlu0 %920 }
 0x4fb   : > { %v927_v57 = vsel %vm2369_vm2, %v921_v45, %v923_v44 }
 0x4fe   : > { %1749 = vrot.lane.b32.xlu1 %v1748_v43, %s1767_s23 }
 0x502   : > { %1239 = vrot.lane.b32.xlu1 %v2174_v40, %s1768_s24 }
 0x506   : > { %1237 = vrot.lane.b32.xlu1 %v2178_v42, %s1768_s24 }
 0x55a   : > { %v904_v52 = vpop.permute.xlu0 %903 }
 0x560   : > { %v1740_v46 = vpop.permute.xlu1 %1739 }
 0x561   : > { %v1741_v47 = vunpack.i.l.bf16 %v1740_v46  ;;  %v1742_v9 = vunpack.i.h.bf16 %v1740_v46 }
 0x563   : > { %v917_v50 = vsel %vm2340_vm3, %v1737_v34, %v1741_v47  ;;  %v919_v51 = vsel %vm2340_vm3, %v1741_v47, %v1736_v35 }
 0x564   : > { %v1657_v53 = vpack.c.bf16 %v880_v62, %v919_v51  ;;  %v1660_v54 = vpack.c.bf16 %v882_v15, %v917_v50  ;;  %v925_v55 = vpop.permute.xlu1 %924  ;;  %v902_v62 = vpop.permute.xlu0 %901 }
 0x565   : > { %v926_v56 = vsel %vm2368_vm0, %v923_v44, %v925_v55  ;;  %v928_v10 = vsel %vm2370_vm1, %v925_v55, %v921_v45  ;;  %vm2371_vm0 = vcmask 195584   ;;  %vm2373_vm1 = vmmov 0  }
 0x566   : > { %1658 = vmatpush1.bf16.msra.mxu0 %v1657_v53  ;;  %1661 = vmatpush3.bf16.msra.mxu1 %v1660_v54  ;;  %vm2372_vm2 = vmmov %vm2371_vm0 }
 0x567   : > { %938 = vmatprep.subr.mxu0 %v926_v56  ;;  %1611 = vmatprep.subr.mxu1 %v1770_v7 }
 0x568   : > { %v1745_v58 = vpop.permute.xlu1 %1744 }
 0x569   : > { %v1747_v18 = vunpack.i.h.bf16 %v1745_v58  ;;  %v1746_v59 = vunpack.i.l.bf16 %v1745_v58 }
 0x56a   : > { %939 = vmatpush1.msra.mxu0 %v927_v57  ;;  %1612 = vmatpush3.msra.mxu1 %v928_v10 }
 0x56b   : > { %v900_v11 = vsel %vm2340_vm3, %v1747_v18, %v1742_v9  ;;  %v898_v12 = vsel %vm2340_vm3, %v1746_v59, %v1747_v18  ;;  %1614 = vmatmul.mubr.msk.f32.vlgmr.msra.gmra.mrb[2].mxu1 %vm2371_vm0, %v1546_v3  ;;  %1547 = vmatmul.mubr.msk.f32.vlgmr.msra.gmra.mrb[2].mxu0 %vm2372_vm2, %v1546_v3  ;;  %v899_v15 = vsel %vm2340_vm3, %v1742_v9, %v1746_v59  ;;  %vm2374_vm0 = vcmp.lt.s32.totalorder %v1844_v5, 127 }
 0x56c   : > { %v1664_v16 = vpack.c.bf16 %v2151_v25, %v900_v11  ;;  %v1667_v17 = vpack.c.bf16 %v889_v32, %v898_v12  ;;  %v906_v19 = vpop.permute.xlu1 %905  ;;  %1666 = vmatprep.subr.bf16.mxu1 %v1769_v6  ;;  %v1662_v21 = vpack.c.bf16 %v2145_v20, %v899_v15  ;;  %1622 = vmatprep.mubr.msk.f32.mxu1 %vm2373_vm1, %v1770_v7  ;;  %v1233_v25 = vpop.permute.xlu0 %1232  ;;  %v910_v20 = vld [vmem:[%s2330_s3] sm:$0xff]  ;;  %vm2375_vm2 = vmmov %vm2374_vm0 }
 0x56d   : > { %1142 = vmatprep.mubr.f32.mxu0 %v1770_v7  ;;  %v907_v22 = vsel %vm2374_vm0, %v904_v52, %v906_v19  ;;  %v909_v29 = vsel %vm2375_vm2, %v906_v19, %v902_v62  ;;  %vm2376_vm3 = vmmov %vm2374_vm0  ;;  %vm2377_vm0 = vcmp.lt.s32.totalorder %v1844_v5, 1 }
 0x56e   : > { %1663 = vmatprep.subr.bf16.mxu0 %v1662_v21  ;;  %1668 = vmatpush3.bf16.msra.mxu1 %v1667_v17  ;;  %v908_v33 = vsel %vm2376_vm3, %v902_v62, %v904_v52  ;;  %vm2378_vm4 = vmmov %vm2377_vm0 }
 0x56f   : > { %1665 = vmatpush1.bf16.msra.mxu0 %v1664_v16  ;;  %1620 = vmatprep.subr.mxu1 %v1770_v7  ;;  %vm2380_vm7 = vmmov %vm2377_vm0 }
 0x570   : > { %v1750_v26 = vpop.permute.xlu1 %1749  ;;  %1082 = vmatprep.subr.mxu0 %v907_v22  ;;  %vm2381_vm2 = vmmov %vm2379_vm5  ;;  %v1242_v45 = vpop.permute.xlu0 %1241 }
 0x571   : > { %v1752_v30 = vunpack.i.h.bf16 %v1750_v26  ;;  %v1751_v32 = vunpack.i.l.bf16 %v1750_v26 }
 0x572   : > { %1621 = vmatpush3.msra.mxu1 %v909_v29 }
 0x573   : > { %v1234_v34 = vsel %vm2377_vm0, %v1752_v30, %v1233_v25  ;;  %v1236_v35 = vsel %vm2378_vm4, %v1233_v25, %v1751_v32  ;;  %1083 = vmatpush1.msra.mxu0 %v908_v33  ;;  %1623 = vmatmul.mubr.msk.f32.vlgmr.msra.gmra.mrb[2].mxu1 %vm2379_vm5, %v910_v20  ;;  %v1235_v36 = vsel %vm2380_vm7, %v1751_v32, %v1752_v30  ;;  %vm2382_vm4 = vmmov %vm2376_vm3  ;;  %vm2386_vm0 = vcmp.lt.s32.totalorder %v1844_v5, 126 }
 0x574   : > { %v1671_v38 = vpack.c.bf16 %v2178_v42, %v1236_v35  ;;  %v1674_v39 = vpack.c.bf16 %v2159_v31, %v1234_v34  ;;  %v1240_v43 = vpop.permute.xlu1 %1239  ;;  %1549 = vmatmul.mubr.msk.f32.vlgmr.msra.gmra.mrb[2].mxu0 %vm2381_vm2, %v910_v20  ;;  %1673 = vmatprep.subr.bf16.mxu1 %v1769_v6  ;;  %v1669_v44 = vpack.c.bf16 %v2174_v40, %v1235_v36  ;;  %v1551_v6 = vld [vmem:[%s2330_s3 + $0x10] sm:$0xff]  ;;  %vm2383_vm5 = vmmov %vm2376_vm3 }
 0x575   : > { %1631 = vmatprep.mubr.msk.f32.mxu1 %vm2373_vm1, %v1770_v7  ;;  %1315 = vmatprep.mubr.f32.mxu0 %v1770_v7  ;;  %v1243_v42 = vsel %vm2376_vm3, %v1240_v43, %v1242_v45  ;;  %vm2384_vm7 = vmmov %vm2381_vm2 }
 0x576   : > { %1670 = vmatprep.subr.bf16.mxu0 %v1669_v44  ;;  %1675 = vmatpush3.bf16.msra.mxu1 %v1674_v39  ;;  %vm2385_vm1 = vmmov %vm2381_vm2 }
 0x577   : > { %1672 = vmatpush1.bf16.msra.mxu0 %v1671_v38  ;;  %1629 = vmatprep.subr.mxu1 %v1770_v7  ;;  %vm2387_vm2 = vmmov %vm2386_vm0 }
 0x578   : > { %v1238_v31 = vpop.permute.xlu1 %1237  ;;  %1255 = vmatprep.subr.mxu0 %v1243_v42  ;;  %vm2388_vm3 = vmmov %vm2386_vm0 }
 0x579   : > { %v1244_v40 = vsel %vm2382_vm4, %v1238_v31, %v1240_v43  ;;  %v1245_v46 = vsel %vm2383_vm5, %v1242_v45, %v1238_v31  ;;  %vm2399_vm5 = vnez %v2365_v8 }
 0x57a   : > { %1630 = vmatpush3.msra.mxu1 %v1245_v46 }
 0x57b   : > { %1256 = vmatpush1.msra.mxu0 %v1244_v40  ;;  %1632 = vmatmul.mubr.msk.f32.vlgmr.msra.gmra.mrb[2].mxu1 %vm2384_vm7, %v1551_v6  ;;  %vm2400_vm7 = vnez %v2367_v61 }
 0x57c   : > { %1552 = vmatmul.mubr.msk.f32.vlgmr.msra.gmra.mrb[2].mxu0 %vm2385_vm1, %v1551_v6 }
 0x64e   : > { %v1388_v47 = vpop.f32.mrb[2].mxu1 }
 0x64f   : > { %v1317_v7 = vpop.f32.mrb[2].mxu0  ;;  %v1633_v50 = vpop.f32.mrb[3].mxu1  ;;  %v1397_v54 = vmul.f32 %v1388_v47, %v1995_v4 }
 0x650   : > { %v1395_v51 = vmul.f32 %v1317_v7, %v1991_v23  ;;  %v1319_v52 = vpop.f32.mrb[3].mxu0 }
 0x651   : > { %v1396_v53 = vmul.f32 %v1319_v52, %v1993_v24  ;;  %v1404_v3 = vmul.f32 %v1397_v54, %v1388_v47 }
 0x652   : > { %v1402_v55 = vmul.f32 %v1395_v51, %v1317_v7 }
 0x653   : > { %v1403_v56 = vmul.f32 %v1396_v53, %v1319_v52  ;;  %v1398_v57 = vadd.f32 %v1396_v53, %v1395_v51 }
 0x655   : > { %v1399_v58 = vadd.f32 %v1398_v57, %v1397_v54  ;;  %v1405_v9 = vadd.f32 %v1403_v56, %v1402_v55 }
 0x657   : > { %1400 = vadd.xlane.f32.xlu0 %v1399_v58  ;;  %v1406_v10 = vadd.f32 %v1405_v9, %v1404_v3 }
 0x659   : > { %1407 = vadd.xlane.f32.xlu1 %v1406_v10 }
 0x6e4   : > { %v1401_v18 = vpop.xlane.xlu0 %1400 }
 0x6e5   : > { %v1409_v59 = vmul.f32 0.00390625, %v1401_v18 }
 0x6e6   : > { %v1408_v62 = vpop.xlane.xlu1 %1407 }
 0x6e7   : > { %v1410_v11 = vmul.f32 0.00390625, %v1408_v62  ;;  %v1411_v12 = vmul.f32 %v1409_v59, %v1409_v59  ;;  %v1415_v24 = vsub.f32 %v1319_v52, %v1409_v59  ;;  %v1414_v4 = vsub.f32 %v1317_v7, %v1409_v59 }
 0x6e8   : > { %v1416_v22 = vsub.f32 %v1388_v47, %v1409_v59 }
 0x6e9   : > { %v1412_v23 = vsub.f32 %v1410_v11, %v1411_v12 }
 0x6eb   : > { %v1413_v15 = vmax.f32 %v1412_v23, 0.0 }
 0x6ed   : > { %v1417_v16 = vadd.f32 1e-05, %v1413_v15 }
 0x6ef   : > { %1755 = vrsqrt.f32 %v1417_v16 }
 0x6f9   : > { %v1756_v17 = vpop.eup %1755 }
 0x6fa   : > { %v1420_v19 = vmul.f32 %v1756_v17, %v1415_v24  ;;  %v1419_v21 = vmul.f32 %v1756_v17, %v1414_v4  ;;  %v1421_v20 = vmul.f32 %v1756_v17, %v1416_v22 }
 0x6fc   : > { %v1423_v25 = vadd.f32 %v1420_v19, %v1826_v2  ;;  %v1422_v26 = vadd.f32 %v1419_v21, %v1820_v1  ;;  %v1424_v29 = vadd.f32 %v1421_v20, %v1818_v0 }
 0x6fe   : > { %1427 = vrot.lane.b32.xlu1 %v1423_v25, %s1772_s11  ;;  %1425 = vrot.lane.b32.xlu0 %v1422_v26, %s1772_s11 }
 0x702   : > { %1429 = vrot.lane.b32.xlu0 %v1424_v29, %s1772_s11 }
 0x770   : > { %v1428_v30 = vpop.permute.xlu1 %1427  ;;  %v1426_v32 = vpop.permute.xlu0 %1425 }
 0x771   : > { %v1432_v33 = vsel %vm2386_vm0, %v1426_v32, %v1428_v30 }
 0x772   : > { %v1434_v34 = vsel %vm2012_vm10, %v1432_v33, %v1422_v26  ;;  %vm2389_vm10 = vcmp.lt.s32.totalorder %v1844_v5, 2 }
 0x773   : > { %1437 = vrot.lane.b32.xlu1 %v1434_v34, %s1774_s12  ;;  %vm2390_vm4 = vmmov %vm2389_vm10 }
 0x774   : > { %v1430_v1 = vpop.permute.xlu0 %1429 }
 0x775   : > { %v1431_v2 = vsel %vm2387_vm2, %v1428_v30, %v1430_v1  ;;  %v1433_v35 = vsel %vm2388_vm3, %v1430_v1, %v1426_v32 }
 0x776   : > { %v1436_v0 = vsel %vm2023_vm11, %v1433_v35, %v1424_v29  ;;  %v1435_v36 = vsel %vm2027_vm12, %v1431_v2, %v1423_v25  ;;  %vm2391_vm11 = vmmov %vm2390_vm4  ;;  %vm2392_vm12 = vcmp.lt.s32.totalorder %v1844_v5, 92 }
 0x777   : > { %1441 = vrot.lane.b32.xlu1 %v1436_v0, %s1774_s12  ;;  %1439 = vrot.lane.b32.xlu0 %v1435_v36, %s1774_s12 }
 0x7e5   : > { %v1438_v63 = vpop.permute.xlu1 %1437 }
 0x7e9   : > { %v1442_v38 = vpop.permute.xlu1 %1441  ;;  %v1440_v39 = vpop.permute.xlu0 %1439 }
 0x7ea   : > { %v1445_v43 = vsel %vm2389_vm10, %v1442_v38, %v1438_v63  ;;  %v1444_v44 = vsel %vm2390_vm4, %v1438_v63, %v1440_v39  ;;  %v1443_v45 = vsel %vm2391_vm11, %v1440_v39, %v1442_v38 }
 0x7eb   : > { %v1446_v13 = vsel %vm2045_vm14, %v1445_v43, %v1434_v34  ;;  %v1447_v14 = vsel %vm2049_vm15, %v1444_v44, %v1435_v36  ;;  %v1448_v42 = vsel %vm2066_vm6, %v1443_v45, %v1436_v0  ;;  %vm2393_vm14 = vmmov %vm2392_vm12  ;;  %vm2395_vm6 = vcmp.lt.s32.totalorder %v1844_v5, 36 }
 0x7ec   : > { %1449 = vrot.lane.b32.xlu0 %v1446_v13, %s1775_s13  ;;  %1451 = vrot.lane.b32.xlu1 %v1447_v14, %s1775_s13  ;;  %vm2394_vm15 = vmmov %vm2392_vm12 }
 0x7f0   : > { %1453 = vrot.lane.b32.xlu0 %v1448_v42, %s1775_s13 }
 0x85e   : > { %v1452_v31 = vpop.permute.xlu1 %1451  ;;  %v1450_v6 = vpop.permute.xlu0 %1449 }
 0x85f   : > { %v1456_v27 = vsel %vm2392_vm12, %v1450_v6, %v1452_v31 }
 0x860   : > { %v1458_v28 = vsel %vm2076_vm8, %v1456_v27, %v1446_v13  ;;  %vm2398_vm8 = vnez %v2363_v60 }
 0x861   : > { %1461 = vrot.lane.b32.xlu1 %v1458_v28, %s1776_s14 }
 0x862   : > { %v1454_v40 = vpop.permute.xlu0 %1453 }
 0x863   : > { %v1455_v46 = vsel %vm2393_vm14, %v1452_v31, %v1454_v40  ;;  %v1457_v37 = vsel %vm2394_vm15, %v1454_v40, %v1450_v6 }
 0x864   : > { %v1460_v47 = vsel %vm2087_vm13, %v1457_v37, %v1448_v42  ;;  %v1459_v7 = vsel %vm2091_vm9, %v1455_v46, %v1447_v14  ;;  %vm2396_vm13 = vmmov %vm2395_vm6 }
 0x865   : > { %1465 = vrot.lane.b32.xlu1 %v1460_v47, %s1776_s14  ;;  %1463 = vrot.lane.b32.xlu0 %v1459_v7, %s1776_s14  ;;  %vm2397_vm9 = vmmov %vm2395_vm6 }
 0x8d3   : > { %v1462_v41 = vpop.permute.xlu1 %1461 }
 0x8d7   : > { %v1466_v50 = vpop.permute.xlu1 %1465  ;;  %v1464_v51 = vpop.permute.xlu0 %1463 }
 0x8d8   : > { %v1469_v52 = vsel %vm2395_vm6, %v1466_v50, %v1462_v41  ;;  %v1467_v48 = vsel %vm2396_vm13, %v1464_v51, %v1466_v50  ;;  %v1468_v49 = vsel %vm2397_vm9, %v1462_v41, %v1464_v51 }
 0x8d9   : > { %v1470_v53 = vsel %vm2398_vm8, %v1469_v52, %v1458_v28  ;;  %v1471_v54 = vsel %vm2399_vm5, %v1468_v49, %v1459_v7  ;;  %v1472_v55 = vsel %vm2400_vm7, %v1467_v48, %v1460_v47 }
 0x8da   : > { %1473 = vst [vmem:[%s197_s26] sm:$0xff] %v1470_v53  ;;  %1474 = vst [vmem:[%s197_s26 + $0x8] sm:$0xff] %v1471_v54 }
 0x8db   : > { %1475 = vst [vmem:[%s197_s26 + $0x10] sm:$0xff] %v1472_v55 }
 0x8dc PF: > { %s14_s15 = sadd.s32 1, %s1763_s15  }
 0x8dd   : > { %p11_p4 = scmp.ge.s32.totalorder %s14_s15, 4  }
 0x8df   :  { %13 = sbr.rel (!%p11_p4) target bundleno = 1 (0x1), region = 70 }

</bundles_post_ra>
